<compile_context>
chip_gen: v5e
topology: v5e:2x2
jax: 0.10.0
libtpu: 0.0.40
codegen_flags: <defaults>
</compile_context>

<pallas_src>
import math

import jax
import jax.numpy as jnp
from jax.experimental import pallas as pl
from jax.experimental.pallas import tpu as pltpu


def _round_up(x, m):
    return (x + m - 1) // m * m


def _choose_tile_m(M, W, tile_m_target):
    """Rows of the flattened (N*H*W, C) activation per grid step.

    Must be a multiple of 2*W (whole 2x2-pool row-pairs) and of 64 (so both the
    input tile and the pooled output tile stay sublane aligned for f32/bf16).
    Capped so the grid gets at least two steps when M allows (v7x has 2 TCs).
    On v6e/v5e (128 MiB VMEM) tile_m_target can be raised to 1024+.
    """
    unit = math.lcm(2 * W, 64)
    tm = max(unit, (int(tile_m_target) // unit) * unit)
    half = _round_up(-(-M // 2), unit)          # cdiv(M, 2) rounded to unit
    return max(unit, min(tm, half))


def _pool_matrix(tm, W):
    """(tm//4, tm) matrix averaging each 2x2 window of a row-pair-aligned tile.

    Input rows inside a tile are in plain NHWC order (row_pair, dh, w); output
    rows come out in (row_pair, wo) order, i.e. N,Ho,Wo row-major.
    """
    Wo = W // 2
    j = jnp.arange(tm // 4)
    out_pair = j // Wo
    out_wo = j % Wo
    i = jnp.arange(tm)
    in_pair = i // (2 * W)
    in_w = i % W
    hit = (in_pair[None, :] == out_pair[:, None]) & (
        (in_w[None, :] // 2) == out_wo[:, None])
    return jnp.where(hit, 0.25, 0.0)


def _transition_kernel(x_ref, bn_ref, p_ref, w_ref, o_ref):
    # Folded BatchNorm + ReLU on the VPU (dtype chosen by the caller: f32 for
    # accuracy / v5e, bf16 on v6e/v7x to halve VALU issues).
    bn = bn_ref[...]
    y = jnp.maximum(x_ref[...] * bn[0:1, :] + bn[1:2, :], 0.0)
    # 2x2 average pool as a small constant matmul (no reshapes / relayouts).
    pooled = jnp.dot(p_ref[...], y.astype(p_ref.dtype),
                     preferred_element_type=jnp.float32)     # (tm//4, Cin_pad)
    # 1x1 conv == channel matmul on the MXU (pool and conv commute exactly).
    z = jnp.dot(pooled.astype(w_ref.dtype), w_ref[...],
                preferred_element_type=jnp.float32)          # (tm//4, Cout_pad)
    o_ref[...] = z.astype(o_ref.dtype)


def transition_forward_nhwc(x_nhwc, gamma, beta, running_mean, running_var,
                            conv_w, eps=1e-5, *, matmul_dtype=jnp.bfloat16,
                            bn_dtype=jnp.float32, out_dtype=None,
                            tile_m_target=512):
    """BN -> ReLU -> 1x1 conv (no bias) -> AvgPool2d(2,2), NHWC in / NHWC out.

    x_nhwc : (N, H, W, Cin)   conv_w : (Cout, Cin) or (Cout, Cin, 1, 1)
    returns: (N, H//2, W//2, Cout).  No transposes around the kernel -- only
    free reshapes (plus a zero-pad when Cin/Cout are not 128 multiples or the
    flattened M does not divide the tile).
    """
    N, H, W, Cin = x_nhwc.shape
    assert H % 2 == 0 and W % 2 == 0, "AvgPool2d(2,2) requires even H and W"
    conv_w2 = jnp.reshape(conv_w, (conv_w.shape[0], -1))
    Cout = conv_w2.shape[0]
    assert conv_w2.shape[1] == Cin
    Ho, Wo = H // 2, W // 2
    M = N * H * W
    if out_dtype is None:
        out_dtype = x_nhwc.dtype

    # Fold BN (inference running stats) into per-channel scale/shift.
    scale = gamma / jnp.sqrt(running_var + eps)
    shift = beta - running_mean * scale
    bn = jnp.stack([scale, shift])                            # (2, Cin)

    tm = _choose_tile_m(M, W, tile_m_target)
    M_pad = _round_up(M, tm)
    Cin_pad = _round_up(Cin, 128)    # lane-dense loads  (no-op for real DenseNet)
    Cout_pad = _round_up(Cout, 128)  # lane-dense stores (no-op for real DenseNet)

    x2 = x_nhwc.reshape(M, Cin)                               # free NHWC reshape
    if M_pad != M or Cin_pad != Cin:
        x2 = jnp.pad(x2, ((0, M_pad - M), (0, Cin_pad - Cin)))
    if Cin_pad != Cin:
        bn = jnp.pad(bn, ((0, 0), (0, Cin_pad - Cin)))
    bn = bn.astype(bn_dtype)

    w = conv_w2.T                                             # (Cin, Cout)
    if Cin_pad != Cin or Cout_pad != Cout:
        w = jnp.pad(w, ((0, Cin_pad - Cin), (0, Cout_pad - Cout)))
    w = w.astype(matmul_dtype)

    P = _pool_matrix(tm, W).astype(matmul_dtype)              # (tm//4, tm)

    grid = (M_pad // tm,)
    flops = 2 * (M_pad // 4) * Cin_pad * (tm + Cout_pad)
    bytes_accessed = (M_pad * Cin_pad * x2.dtype.itemsize
                      + Cin_pad * Cout_pad * w.dtype.itemsize
                      + (tm // 4) * tm * P.dtype.itemsize
                      + 2 * Cin_pad * bn.dtype.itemsize
                      + (M_pad // 4) * Cout_pad * jnp.dtype(out_dtype).itemsize)

    # TODO(synk): for very large Cin (>= 2048) add an "arbitrary" K grid axis
    # with an f32 VMEM accumulator so the x tile stays bounded under v7x VMEM.
    out = pl.pallas_call(
        _transition_kernel,
        out_shape=jax.ShapeDtypeStruct((M_pad // 4, Cout_pad), out_dtype),
        grid=grid,
        in_specs=[
            pl.BlockSpec((tm, Cin_pad), lambda i: (i, 0)),        # activation
            pl.BlockSpec((2, Cin_pad), lambda i: (0, 0)),         # BN scale/shift
            pl.BlockSpec((tm // 4, tm), lambda i: (0, 0)),        # pool matrix
            pl.BlockSpec((Cin_pad, Cout_pad), lambda i: (0, 0)),  # conv weight
        ],
        out_specs=pl.BlockSpec((tm // 4, Cout_pad), lambda i: (i, 0)),
        compiler_params=pltpu.CompilerParams(
            dimension_semantics=("parallel",),
            vmem_limit_bytes=48 * 1024 * 1024,
        ),
        cost_estimate=pl.CostEstimate(flops=int(flops), transcendentals=0,
                                      bytes_accessed=int(bytes_accessed)),
    )(x2, bn, P, w)

    return out[: M // 4, :Cout].reshape(N, Ho, Wo, Cout)


def transition_forward(x_nchw, gamma, beta, running_mean, running_var, conv_w,
                       eps=1e-5, **kwargs):
    """NCHW wrapper matching the PyTorch module interface."""
    # TODO(synk): these two transposes are pure layout glue for the NCHW
    # interface; an NHWC-resident network should call transition_forward_nhwc
    # directly and they disappear entirely.
    x_nhwc = jnp.transpose(x_nchw, (0, 2, 3, 1))
    out = transition_forward_nhwc(x_nhwc, gamma, beta, running_mean,
                                  running_var, conv_w, eps, **kwargs)
    return jnp.transpose(out, (0, 3, 1, 2))


def _reference(x, gamma, beta, mean, var, conv_w, eps=1e-5):
    # Pure-JAX reference reproducing the PyTorch op order exactly (NCHW).
    w = jnp.reshape(conv_w, (conv_w.shape[0], -1))
    xn = (x - mean[None, :, None, None]) / jnp.sqrt(var[None, :, None, None] + eps)
    xn = xn * gamma[None, :, None, None] + beta[None, :, None, None]
    xn = jnp.maximum(xn, 0.0)
    c = jnp.einsum("nchw,oc->nohw", xn, w)
    N, Co, H, W = c.shape
    c = c.reshape(N, Co, H // 2, 2, W // 2, 2)
    return c.mean(axis=(3, 5))


if __name__ == "__main__":
    key = jax.random.PRNGKey(0)
    kx, kg, kb, km, kv, kw = jax.random.split(key, 6)

    N, Cin, H, W = 2, 4, 16, 16
    Cout = Cin // 2  # DenseNet transition typically halves the channels

    x = jax.random.normal(kx, (N, Cin, H, W), jnp.float32)
    gamma = 1.0 + 0.1 * jax.random.normal(kg, (Cin,), jnp.float32)
    beta = 0.1 * jax.random.normal(kb, (Cin,), jnp.float32)
    running_mean = 0.1 * jax.random.normal(km, (Cin,), jnp.float32)
    running_var = jax.random.uniform(kv, (Cin,), jnp.float32,
                                     minval=0.5, maxval=1.5)
    # nn.Conv2d(Cin, Cout, 1, bias=False) weight shape (Cout, Cin, 1, 1).
    conv_w = 0.1 * jax.random.normal(kw, (Cout, Cin, 1, 1), jnp.float32)

    ref = _reference(x, gamma, beta, running_mean, running_var, conv_w)

    # 1) NCHW interface, f32 operands end-to-end (validation path).  Tolerance
    #    kept loose enough to be robust to the MXU's f32 lowering strategy
    #    across TPU generations (typically accurate to ~1e-6).
    out_f32 = transition_forward(x, gamma, beta, running_mean, running_var,
                                 conv_w, matmul_dtype=jnp.float32,
                                 bn_dtype=jnp.float32, out_dtype=jnp.float32)
    out_f32 = jax.block_until_ready(out_f32)
    assert out_f32.shape == (N, Cout, H // 2, W // 2), out_f32.shape
    err_f32 = float(jnp.max(jnp.abs(out_f32 - ref)))
    assert err_f32 < 2e-2, err_f32

    # 2) NHWC fast path: bf16 activations in, bf16 out, bf16 BN/matmul
    #    (the layout/dtype contract the perf review asks the network to keep).
    x_nhwc_bf16 = jnp.transpose(x, (0, 2, 3, 1)).astype(jnp.bfloat16)
    out_bf16 = transition_forward_nhwc(x_nhwc_bf16, gamma, beta, running_mean,
                                       running_var, conv_w,
                                       matmul_dtype=jnp.bfloat16,
                                       bn_dtype=jnp.bfloat16,
                                       out_dtype=jnp.bfloat16)
    out_bf16 = jax.block_until_ready(out_bf16)
    assert out_bf16.shape == (N, H // 2, W // 2, Cout), out_bf16.shape
    ref_nhwc = jnp.transpose(ref, (0, 2, 3, 1))
    err_bf16 = float(jnp.max(jnp.abs(out_bf16.astype(jnp.float32) - ref_nhwc)))
    assert err_bf16 < 5e-2, err_bf16

    print("KERNEL_OK")
</pallas_src>

<mosaic_0001>
module attributes {stable_mosaic.version = 11 : i64} {
  func.func @_transition_kernel(%arg0: i32, %arg1: memref<256x128xf32, #tpu.memory_space<vmem>>, %arg2: memref<2x128xf32, #tpu.memory_space<vmem>>, %arg3: memref<64x256xf32, #tpu.memory_space<vmem>>, %arg4: memref<128x128xf32, #tpu.memory_space<vmem>>, %arg5: memref<64x128xf32, #tpu.memory_space<vmem>>) attributes {dimension_semantics = [#tpu.dimension_semantics<parallel>], iteration_bounds = array<i64: 2>, scalar_prefetch = 0 : i64, scratch_operands = 0 : i64, tpu.core_type = #tpu.core_type<tc>, window_params = [{transform_indices = @transform_0, window_bounds = array<i64: 256, 128>}, {pipeline_mode = #tpu.pipeline_mode<synchronous>, transform_indices = @transform_1, window_bounds = array<i64: 2, 128>}, {pipeline_mode = #tpu.pipeline_mode<synchronous>, transform_indices = @transform_2, window_bounds = array<i64: 64, 256>}, {pipeline_mode = #tpu.pipeline_mode<synchronous>, transform_indices = @transform_3, window_bounds = array<i64: 128, 128>}, {transform_indices = @transform_4, window_bounds = array<i64: 64, 128>}]} {
    %c0 = arith.constant 0 : index
    %c0_0 = arith.constant 0 : index
    %0 = vector.load %arg2[%c0, %c0_0] : memref<2x128xf32, #tpu.memory_space<vmem>>, vector<2x128xf32>
    %c0_1 = arith.constant 0 : index
    %c0_2 = arith.constant 0 : index
    %1 = vector.load %arg1[%c0_1, %c0_2] : memref<256x128xf32, #tpu.memory_space<vmem>>, vector<256x128xf32>
    %2 = vector.extract_strided_slice %0 {offsets = [0, 0], sizes = [1, 128], strides = [1, 1]} : vector<2x128xf32> to vector<1x128xf32>
    %3 = vector.broadcast %2 : vector<1x128xf32> to vector<256x128xf32>
    %4 = arith.mulf %1, %3 : vector<256x128xf32>
    %5 = vector.extract_strided_slice %0 {offsets = [1, 0], sizes = [1, 128], strides = [1, 1]} : vector<2x128xf32> to vector<1x128xf32>
    %6 = vector.broadcast %5 : vector<1x128xf32> to vector<256x128xf32>
    %7 = arith.addf %4, %6 : vector<256x128xf32>
    %cst = arith.constant 0.000000e+00 : f32
    %8 = vector.broadcast %cst : f32 to vector<256x128xf32>
    %9 = arith.maximumf %7, %8 : vector<256x128xf32>
    %c0_3 = arith.constant 0 : index
    %c0_4 = arith.constant 0 : index
    %10 = vector.load %arg3[%c0_3, %c0_4] : memref<64x256xf32, #tpu.memory_space<vmem>>, vector<64x256xf32>
    %cst_5 = arith.constant dense<0.000000e+00> : vector<64x128xf32>
    %11 = tpu.matmul %10, %9, %cst_5 {dimension_numbers = #tpu.dot_dimension_numbers<[1], [0], [0], [1], [0, 0, 1, 1], [], []>} : vector<64x256xf32>, vector<256x128xf32>, vector<64x128xf32> -> vector<64x128xf32>
    %c0_6 = arith.constant 0 : index
    %c0_7 = arith.constant 0 : index
    %12 = vector.load %arg4[%c0_6, %c0_7] : memref<128x128xf32, #tpu.memory_space<vmem>>, vector<128x128xf32>
    %cst_8 = arith.constant dense<0.000000e+00> : vector<64x128xf32>
    %13 = tpu.matmul %11, %12, %cst_8 {dimension_numbers = #tpu.dot_dimension_numbers<[1], [0], [0], [1], [0, 0, 1, 1], [], []>} : vector<64x128xf32>, vector<128x128xf32>, vector<64x128xf32> -> vector<64x128xf32>
    %c0_9 = arith.constant 0 : index
    %c0_10 = arith.constant 0 : index
    %14 = vector.load %arg5[%c0_9, %c0_10] : memref<64x128xf32, #tpu.memory_space<vmem>>, vector<64x128xf32>
    tpu.vector_store %arg5[%c0_9, %c0_10], %13 {strides = array<i32>} : memref<64x128xf32, #tpu.memory_space<vmem>>, vector<64x128xf32>,
    return
  }
  func.func @transform_0(%arg0: i32) -> (i32, i32) {
    %c0_i32 = arith.constant 0 : i32
    %c0_i32_0 = arith.constant 0 : i32
    return %arg0, %c0_i32 : i32, i32
  }
  func.func @transform_1(%arg0: i32) -> (i32, i32) {
    %c0_i32 = arith.constant 0 : i32
    %c0_i32_0 = arith.constant 0 : i32
    %c0_i32_1 = arith.constant 0 : i32
    return %c0_i32, %c0_i32_0 : i32, i32
  }
  func.func @transform_2(%arg0: i32) -> (i32, i32) {
    %c0_i32 = arith.constant 0 : i32
    %c0_i32_0 = arith.constant 0 : i32
    %c0_i32_1 = arith.constant 0 : i32
    return %c0_i32, %c0_i32_0 : i32, i32
  }
  func.func @transform_3(%arg0: i32) -> (i32, i32) {
    %c0_i32 = arith.constant 0 : i32
    %c0_i32_0 = arith.constant 0 : i32
    %c0_i32_1 = arith.constant 0 : i32
    return %c0_i32, %c0_i32_0 : i32, i32
  }
  func.func @transform_4(%arg0: i32) -> (i32, i32) {
    %c0_i32 = arith.constant 0 : i32
    %c0_i32_0 = arith.constant 0 : i32
    return %arg0, %c0_i32 : i32, i32
  }
}

</mosaic_0001>

<bundles_post_ra>
// kernel: tpu_custom_call.1
= control target key start
LH: loop header
LB: loop body
LE: loop exit
PB: predicated region body
PF: predicated region fallthrough
CT: control target
= control target key end

     0   :  { %9 = vsyncpa [#allocation3], 0  ;;  %s1426_s0 = inlined_call_operand.hbm [shape: f32[512,128], index: 0, kind: input, shape index: {}]   ;;  %s1427_s1 = inlined_call_operand.hbm [shape: f32[2,128], index: 1, kind: input, shape index: {}]   ;;  %s1428_s2 = inlined_call_operand.hbm [shape: f32[64,256], index: 2, kind: input, shape index: {}]   ;;  %s1429_s3 = inlined_call_operand.hbm [shape: f32[128,128], index: 3, kind: input, shape index: {}]   ;;  %s1430_s4 = inlined_call_operand.hbm [shape: f32[128,128], index: 4, kind: output, shape index: {}]  }
   0x1   :  { %11 = vsyncpa [#allocation3 + $0x1], 0 }
   0x2   :  { %12 = vsyncpa [#allocation6], 0 }
   0x3   :  { %13 = vsyncpa [#allocation9], 0 }
   0x4   :  { %14 = vsyncpa [#allocation4], 0 }
   0x5   :  { %16 = vsyncpa [#allocation4 + $0x1], 0  ;;  %s1047_s15 = smov 0   ;;  %s1049_s16 = smov 0  }
   0x6   :  { %s1051_s17 = smov 0   ;;  %s1053_s18 = smov 0  }
   0x7 LB: > { %s1068_s19 = sadd.s32 4294967295, %s1011_s18   ;;  %s680_s20 = sadd.s32 4294967294, %s1011_s18   ;;  %s1011_s18 = sphi %s1053_s18, %s1441_s18   ;;  %s1007_s17 = sphi %s1051_s17, %s1440_s17   ;;  %s1003_s16 = sphi %s1049_s16, %s1439_s16   ;;  %s999_s15 = sphi %s1047_s15, %s1438_s15  }
   0x8   : > { %p42_p0 = scmp.ne.s32.totalorder %s1003_s16, %s999_s15  ;;  %p43_p1 = scmp.eq.s32.totalorder %s1068_s19, 0 }
   0x9   : > { %p129_p2 = scmp.eq.s32.totalorder %s1068_s19, 1  ;;  %p135_p3 = scmp.eq.s32.totalorder %s680_s20, 1 }
   0xa   : > { %p1077_p4 = por %p43_p1, %p42_p0  ;;  %p681_p5 = scmp.ge.s32.totalorder %s1011_s18, 1 }
   0xb   : > { %p1082_p6 = por %p135_p3, %p42_p0  ;;  %p142_p7 = scmp.lt.s32.totalorder %s1011_s18, 3 }
   0xc   : > { %s154_s25 = sshll.u32 %s1427_s1, 4  ;;  %s1013_s27 = smov [#allocation5]   ;;  %s155_s25 = int_to_ptr.hbm [resolvable:$true] %s154_s25 }
   0xd   : > { %p1090_p8 = pnand %p681_p5, %p142_p7  ;;  %s156_s28 = sshll.u32 %s1013_s27, 4  ;;  %s157_s28 = int_to_ptr.vmem [resolvable:$true] %s156_s28 }
   0xe   : > { %s165_s5 = sshll.u32 %s1428_s2, 4  ;;  %s1014_s7 = smov [#allocation7]   ;;  %s166_s5 = int_to_ptr.hbm [resolvable:$true] %s165_s5 }
   0xf   : > { %p750_p10 = pneg %p1090_p8  ;;  %s167_s8 = sshll.u32 %s1014_s7, 4  ;;  %s168_s8 = int_to_ptr.vmem [resolvable:$true] %s167_s8 }
  0x10   : > { %s1015_s9 = smov 256   ;;  %s1016_s10 = smov 16  }
  0x11   : > { %p1102_p11 = pnand %p750_p10, %p43_p1  ;;  %s179_s13 = sshll.u32 %s1429_s3, 4  ;;  %s180_s13 = int_to_ptr.hbm [resolvable:$true] %s179_s13 }
  0x12   : > { %s1017_s14 = smov [#allocation8]   ;;  %s1018_s23 = smov 128  }
  0x13   : > { %753 = dma.hbm_to_vmem [thread:$0]  (!%p1102_p11), %s155_s25, 32, %s157_s28, [#allocation6]  }
  0x14   : > { %756 = dma.hbm_to_vmem [thread:$0]  (!%p1102_p11), %s166_s5, 2048, %s168_s8, [#allocation6], %s1015_s9, %s1015_s9, %s1016_s10  }
  0x15   : > { %s181_s20 = sshll.u32 %s1017_s14, 4  ;;  %s1019_s24 = smov 8   ;;  %s182_s20 = int_to_ptr.vmem [resolvable:$true] %s181_s20 }
  0x16   : > { %759 = dma.hbm_to_vmem [thread:$0]  (!%p1102_p11), %s180_s13, 2048, %s182_s20, [#allocation9], %s1018_s23, %s1018_s23, %s1019_s24  }
  0x17   : > { %s1119_s25 = sadd.s32 1, %s1011_s18   ;;  %s29_s28 = sadd.s32 1, %s1007_s17 }
  0x18   : > { %s26_s27 = ssub.s32 %s1011_s18, %s1119_s25  ;;  %p36_p13 = scmp.ne.s32.totalorder %s1007_s17, %s1003_s16 }
  0x19   : > { %p27_p12 = scmp.eq.s32.totalorder %s26_s27, 0  ;;  %p37_p0 = scmp.eq.s32.totalorder %s1011_s18, 0 }
  0x1a   : > { %p1132_p3 = por %p129_p2, %p36_p13  ;;  %p771_p5 = scmp.lt.s32.totalorder %s1011_s18, 2 }
  0x1b   : > { %s1128_s29 = scalar_select %p27_p12, %s1007_s17, %s29_s28  }
  0x1c   : > { %s195_s5 = sand.u32 1, %s1007_s17   ;;  %s700_s6 = sshll.u32 %s1011_s18, 8 }
  0x1d   : > { %p38_p7 = por %p37_p0, %p36_p13  ;;  %s686_s7 = sshll.u32 %s195_s5, 8 }
  0x1e   : > { %s204_s10 = scalar_lea.hbm %s1426_s0, %s700_s6  ;;  %s199_s12 = scalar_lea.vmem [#allocation2], %s686_s7 }
  0x1f   : > { %s205_s11 = sshll.u32 %s204_s10, 4  ;;  %s207_s13 = sshll.u32 %s199_s12, 4  ;;  %s206_s11 = int_to_ptr.hbm [resolvable:$true] %s205_s11  ;;  %s208_s13 = int_to_ptr.vmem [resolvable:$true] %s207_s13 }
  0x20   : > { %p1142_p10 = pnand %p771_p5, %p38_p7  ;;  %s196_s20 = scalar_lea.sflag [#allocation3], %s195_s5 }
  0x21   : > { %s907_s27 = sshra.s32 %s206_s11, 4  ;;  %s914_s7 = scalar_lea.hbm %s1426_s0, 512  ;;  %s908_s27 = int_to_ptr.hbm [resolvable:$true] %s907_s27 }
  0x22   : > { %s909_s28 = scalar_lea.hbm %s908_s27, 256  ;;  %p911_p11 = pneg %p1142_p10 }
  0x23   : > { %p910_p2 = scmp.ne.s32.totalorder %s908_s27, %s909_s28  ;;  %p915_p0 = scmp.lt.s32.totalorder %s908_s27, %s1426_s0 }
  0x24   : > { %p916_p5 = scmp.lt.s32.totalorder %s914_s7, %s909_s28 }
  0x25   : > { %p912_p12 = pnand %p911_p11, %p910_p2 }
  0x26   : > { %p917_p7 = por %p916_p5, %p915_p0 }
  0x27   : > { %p913_p13 = pneg %p912_p12 }
  0x29   : > { %p918_p9 = pnand %p917_p7, %p913_p13 }
  0x2b   : > { %921 = shalt.err (!%p918_p9)
}
  0x2c   : > { %763 = dma.hbm_to_vmem [thread:$0]  (!%p1142_p10), %s206_s11, 4096, %s208_s13, %s196_s20, %s1018_s23, %s1018_s23, %s1019_s24  }
  0x2d   : > { %219 = sbr.rel (%p1090_p8) target bundleno = 415 (0x19f), region = 36  ;;  %s1162_s5 = sand.u32 (!%p1090_p8), 1, %s1003_s16  }
  0x2e   : > { %s690_s12 = sshll.u32 (!%p1090_p8), %s1162_s5, 8  ;;  %s222_s27 = scalar_lea.sflag (!%p1090_p8), [#allocation3], %s1162_s5 }
  0x2f   : > { %s1166_s28 = scalar_lea.vmem (!%p1090_p8), [#allocation2], %s690_s12 }
  0x32   : > { %982 = dma.done.wait (%p1077_p4), %s222_s27, 4096  }
  0x33   : > { %984 = vsyncadd (%p1077_p4), %s222_s27, 4294963200 }
  0x34   : > { %986 = dma.done.wait (%p43_p1), [#allocation6], 2080  }
  0x35   : > { %988 = vsyncadd (%p43_p1), [#allocation6], 4294965216 }
  0x36   : > { %990 = dma.done.wait (%p43_p1), [#allocation9], 2048  }
  0x37   : > { %992 = vsyncadd (%p43_p1), [#allocation9], 4294965248  ;;  %v268_v0 = vld [vmem:[#allocation5] sm:$0x3]  ;;  %v284_v1 = vld [vmem:[%s1166_s28 + $0x78] sm:$0xff]  ;;  %s694_s21 = sshll.u32 %s1162_s5, 6 }
  0x38   : > { %v300_v2 = vld [vmem:[%s1166_s28 + $0xf8] sm:$0xff]  ;;  %v1182_v3 = vperm.slane %v268_v0, 0  ;;  %v1184_v4 = vperm.slane %v268_v0, 1  ;;  %v283_v5 = vld [vmem:[%s1166_s28 + $0x70] sm:$0xff]  ;;  %v282_v7 = vld [vmem:[%s1166_s28 + $0x68] sm:$0xff]  ;;  %s265_s26 = scalar_lea.vmem [#allocation10], %s694_s21 }
  0x39   : > { %v299_v6 = vld [vmem:[%s1166_s28 + $0xf0] sm:$0xff]  ;;  %v298_v8 = vld [vmem:[%s1166_s28 + $0xe8] sm:$0xff]  ;;  %v281_v9 = vld [vmem:[%s1166_s28 + $0x60] sm:$0xff]  ;;  %s701_s23 = sshll.u32 %s1068_s19, 6  ;;  %s575_s14 = sshll.u32 %s265_s26, 4  ;;  %s576_s14 = int_to_ptr.vmem [resolvable:$true] %s575_s14 }
  0x3a   : > { %v297_v10 = vld [vmem:[%s1166_s28 + $0xe0] sm:$0xff]  ;;  %v317_v11 = vmul.f32 %v1182_v3, %v284_v1  ;;  %v333_v12 = vmul.f32 %v1182_v3, %v300_v2  ;;  %v316_v13 = vmul.f32 %v1182_v3, %v283_v5  ;;  %v332_v14 = vmul.f32 %v1182_v3, %v299_v6  ;;  %v280_v23 = vld [vmem:[%s1166_s28 + $0x58] sm:$0xff]  ;;  %v279_v29 = vld [vmem:[%s1166_s28 + $0x50] sm:$0xff]  ;;  %s574_s13 = scalar_lea.hbm %s1430_s4, %s701_s23  ;;  %s563_s6 = scalar_lea.sflag [#allocation4], %s1162_s5 }
  0x3b   : > { %v315_v15 = vmul.f32 %v1182_v3, %v282_v7  ;;  %v331_v16 = vmul.f32 %v1182_v3, %v298_v8  ;;  %v314_v17 = vmul.f32 %v1182_v3, %v281_v9  ;;  %v330_v18 = vmul.f32 %v1182_v3, %v297_v10  ;;  %v296_v24 = vld [vmem:[%s1166_s28 + $0xd8] sm:$0xff]  ;;  %v295_v30 = vld [vmem:[%s1166_s28 + $0xd0] sm:$0xff]  ;;  %v278_v31 = vld [vmem:[%s1166_s28 + $0x48] sm:$0xff]  ;;  %s577_s20 = sshll.u32 %s574_s13, 4  ;;  %s957_s10 = scalar_lea.hbm %s1430_s4, 128  ;;  %s578_s20 = int_to_ptr.hbm [resolvable:$true] %s577_s20 }
  0x3c   : > { %v350_v19 = vadd.f32 %v1184_v4, %v317_v11  ;;  %v1202_v20 = vadd.f32 %v1184_v4, %v333_v12  ;;  %v349_v21 = vadd.f32 %v1184_v4, %v316_v13  ;;  %v1206_v22 = vadd.f32 %v1184_v4, %v332_v14  ;;  %v294_v36 = vld [vmem:[%s1166_s28 + $0xc8] sm:$0xff]  ;;  %v277_v37 = vld [vmem:[%s1166_s28 + $0x40] sm:$0xff]  ;;  %v276_v55 = vld [vmem:[%s1166_s28 + $0x38] sm:$0xff]  ;;  %s951_s8 = sshra.s32 %s578_s20, 4  ;;  %s952_s8 = int_to_ptr.hbm [resolvable:$true] %s951_s8 }
  0x3d   : > { %v348_v25 = vadd.f32 %v1184_v4, %v315_v15  ;;  %v1212_v26 = vadd.f32 %v1184_v4, %v331_v16  ;;  %v347_v27 = vadd.f32 %v1184_v4, %v314_v17  ;;  %v1216_v28 = vadd.f32 %v1184_v4, %v330_v18  ;;  %v293_v48 = vld [vmem:[%s1166_s28 + $0xc0] sm:$0xff]  ;;  %v292_v56 = vld [vmem:[%s1166_s28 + $0xb8] sm:$0xff]  ;;  %v275_v57 = vld [vmem:[%s1166_s28 + $0x30] sm:$0xff]  ;;  %s953_s7 = scalar_lea.hbm %s952_s8, 64  ;;  %p958_p9 = scmp.lt.s32.totalorder %s952_s8, %s1430_s4 }
  0x3e   : > { %v382_v32 = vmax.f32 %v350_v19, 0.0  ;;  %v398_v33 = vmax.f32 %v1202_v20, 0.0  ;;  %v381_v34 = vmax.f32 %v349_v21, 0.0  ;;  %v397_v35 = vmax.f32 %v1206_v22, 0.0  ;;  %v291_v62 = vld [vmem:[%s1166_s28 + $0xb0] sm:$0xff]  ;;  %v274_v63 = vld [vmem:[%s1166_s28 + $0x28] sm:$0xff]  ;;  %p954_p1 = scmp.ne.s32.totalorder %s952_s8, %s953_s7  ;;  %p959_p10 = scmp.lt.s32.totalorder %s957_s10, %s953_s7 }
  0x3f   : > { %v380_v38 = vmax.f32 %v348_v25, 0.0  ;;  %v396_v39 = vmax.f32 %v1212_v26, 0.0  ;;  %v379_v40 = vmax.f32 %v347_v27, 0.0  ;;  %v313_v41 = vmul.f32 %v1182_v3, %v280_v23  ;;  %v290_v0 = vld [vmem:[%s1166_s28 + $0xa8] sm:$0xff]  ;;  %v273_v9 = vld [vmem:[%s1166_s28 + $0x20] sm:$0xff]  ;;  %v272_v23 = vld [vmem:[%s1166_s28 + $0x18] sm:$0xff] }
  0x40   : > { %415 = vmatpush.msra.mxu0 %v382_v32  ;;  %456 = vmatpush.msra.mxu1 %v398_v33  ;;  %v329_v42 = vmul.f32 %v1182_v3, %v296_v24  ;;  %v312_v43 = vmul.f32 %v1182_v3, %v279_v29  ;;  %v328_v44 = vmul.f32 %v1182_v3, %v295_v30  ;;  %v395_v49 = vmax.f32 %v1216_v28, 0.0  ;;  %v289_v14 = vld [vmem:[%s1166_s28 + $0xa0] sm:$0xff]  ;;  %v288_v24 = vld [vmem:[%s1166_s28 + $0x98] sm:$0xff]  ;;  %v510_v28 = vld [vmem:[#allocation8 + $0x68] sm:$0xff]  ;;  %p955_p4 = pnand %p954_p1, %p1132_p3  ;;  %p960_p2 = por %p959_p10, %p958_p9 }
  0x41   : > { %702 = vmatpush.msra.mxu3 %v382_v32  ;;  %v311_v45 = vmul.f32 %v1182_v3, %v278_v31  ;;  %v327_v46 = vmul.f32 %v1182_v3, %v294_v36  ;;  %v310_v47 = vmul.f32 %v1182_v3, %v277_v37  ;;  %v346_v50 = vadd.f32 %v1184_v4, %v313_v41  ;;  %v287_v36 = vld [vmem:[%s1166_s28 + $0x90] sm:$0xff]  ;;  %v403_v20 = vld [vmem:[#allocation7 + $0x20] sm:$0xff]  ;;  %v512_v22 = vld [vmem:[#allocation8 + $0x78] sm:$0xff] }
  0x42   : > { %416 = vmatpush.msra.mxu0 %v381_v34  ;;  %457 = vmatpush.msra.mxu1 %v397_v35  ;;  %v1241_v51 = vadd.f32 %v1184_v4, %v329_v42  ;;  %v345_v52 = vadd.f32 %v1184_v4, %v312_v43  ;;  %v1245_v53 = vadd.f32 %v1184_v4, %v328_v44  ;;  %v270_v42 = vld [vmem:[%s1166_s28 + $0x8] sm:$0xff]  ;;  %v511_v26 = vld [vmem:[#allocation8 + $0x70] sm:$0xff]  ;;  %p956_p8 = pneg %p955_p4 }
  0x43   : > { %v344_v54 = vadd.f32 %v1184_v4, %v311_v45  ;;  %703 = vmatpush.msra.mxu3 %v381_v34  ;;  %v378_v58 = vmax.f32 %v346_v50, 0.0  ;;  %v1255_v60 = vadd.f32 %v1184_v4, %v327_v46  ;;  %v326_v61 = vmul.f32 %v1182_v3, %v293_v48  ;;  %v271_v34 = vld [vmem:[%s1166_s28 + $0x10] sm:$0xff]  ;;  %v286_v45 = vld [vmem:[%s1166_s28 + $0x88] sm:$0xff]  ;;  %513 = vmatpush.msra.mxu2 %v512_v22 }
  0x44   : > { %417 = vmatpush.msra.mxu0 %v380_v38  ;;  %458 = vmatpush.msra.mxu1 %v396_v39  ;;  %v394_v59 = vmax.f32 %v1241_v51, 0.0  ;;  %v377_v1 = vmax.f32 %v345_v52, 0.0  ;;  %v343_v2 = vadd.f32 %v1184_v4, %v310_v47  ;;  %v393_v5 = vmax.f32 %v1245_v53, 0.0  ;;  %v269_v52 = vld [vmem:[%s1166_s28] sm:$0xff]  ;;  %v507_v53 = vld [vmem:[#allocation8 + $0x50] sm:$0xff]  ;;  %p961_p11 = pnand %p960_p2, %p956_p8 }
  0x45   : > { %704 = vmatpush.msra.mxu3 %v380_v38  ;;  %v1266_v6 = vadd.f32 %v1184_v4, %v326_v61  ;;  %v309_v7 = vmul.f32 %v1182_v3, %v276_v55  ;;  %v325_v8 = vmul.f32 %v1182_v3, %v292_v56  ;;  %v308_v10 = vmul.f32 %v1182_v3, %v275_v57  ;;  %v285_v56 = vld [vmem:[%s1166_s28 + $0x80] sm:$0xff] }
  0x46   : > { %418 = vmatpush.msra.mxu0 %v379_v40  ;;  %459 = vmatpush.msra.mxu1 %v395_v49  ;;  %v324_v11 = vmul.f32 %v1182_v3, %v291_v62  ;;  %v307_v12 = vmul.f32 %v1182_v3, %v274_v63  ;;  %v323_v13 = vmul.f32 %v1182_v3, %v290_v0  ;;  %v376_v15 = vmax.f32 %v344_v54, 0.0  ;;  %v508_v51 = vld [vmem:[#allocation8 + $0x58] sm:$0xff] }
  0x47   : > { %705 = vmatpush.msra.mxu3 %v379_v40  ;;  %v392_v16 = vmax.f32 %v1255_v60, 0.0  ;;  %v342_v17 = vadd.f32 %v1184_v4, %v309_v7  ;;  %v1281_v18 = vadd.f32 %v1184_v4, %v325_v8  ;;  %v341_v19 = vadd.f32 %v1184_v4, %v308_v10  ;;  %514 = vmatpush.msra.mxu2 %v511_v26  ;;  %v505_v60 = vld [vmem:[#allocation8 + $0x40] sm:$0xff] }
  0x48   : > { %419 = vmatpush.msra.mxu0 %v378_v58  ;;  %460 = vmatpush.msra.mxu1 %v394_v59  ;;  %v306_v21 = vmul.f32 %v1182_v3, %v273_v9  ;;  %v375_v25 = vmax.f32 %v343_v2, 0.0  ;;  %v391_v27 = vmax.f32 %v1266_v6, 0.0  ;;  %v1291_v29 = vadd.f32 %v1184_v4, %v324_v11  ;;  %v408_v6 = vld [vmem:[#allocation7 + $0x48] sm:$0xff] }
  0x49   : > { %706 = vmatpush.msra.mxu3 %v378_v58  ;;  %v322_v30 = vmul.f32 %v1182_v3, %v289_v14  ;;  %v340_v31 = vadd.f32 %v1184_v4, %v307_v12  ;;  %v1296_v32 = vadd.f32 %v1184_v4, %v323_v13  ;;  %v374_v37 = vmax.f32 %v342_v17, 0.0  ;;  %515 = vmatpush.msra.mxu2 %v510_v28 }
  0x4a   : > { %420 = vmatpush.msra.mxu0 %v377_v1  ;;  %461 = vmatpush.msra.mxu1 %v393_v5  ;;  %v390_v38 = vmax.f32 %v1281_v18, 0.0  ;;  %v305_v40 = vmul.f32 %v1182_v3, %v272_v23  ;;  %v321_v41 = vmul.f32 %v1182_v3, %v288_v24  ;;  %v373_v43 = vmax.f32 %v341_v19, 0.0  ;;  %v400_v24 = vld [vmem:[#allocation7 + $0x8] sm:$0xff]  ;;  %v414_v18 = vld [vmem:[#allocation7 + $0x78] sm:$0xff] }
  0x4b   : > { %707 = vmatpush.msra.mxu3 %v377_v1  ;;  %v339_v44 = vadd.f32 %v1184_v4, %v306_v21  ;;  %v389_v46 = vmax.f32 %v1291_v29, 0.0  ;;  %v1312_v47 = vadd.f32 %v1184_v4, %v322_v30  ;;  %v304_v48 = vmul.f32 %v1182_v3, %v271_v34  ;;  %v401_v30 = vld [vmem:[#allocation7 + $0x10] sm:$0xff]  ;;  %v502_v29 = vld [vmem:[#allocation8 + $0x28] sm:$0xff] }
  0x4c   : > { %421 = vmatpush.msra.mxu0 %v376_v15  ;;  %462 = vmatpush.msra.mxu1 %v392_v16  ;;  %v320_v50 = vmul.f32 %v1182_v3, %v287_v36  ;;  %v372_v54 = vmax.f32 %v340_v31, 0.0  ;;  %v303_v55 = vmul.f32 %v1182_v3, %v270_v42  ;;  %v388_v57 = vmax.f32 %v1296_v32, 0.0  ;;  %v402_v31 = vld [vmem:[#allocation7 + $0x18] sm:$0xff]  ;;  %v413_v34 = vld [vmem:[#allocation7 + $0x70] sm:$0xff]  ;;  %v501_v32 = vld [vmem:[#allocation8 + $0x20] sm:$0xff] }
  0x4d   : > { %708 = vmatpush.msra.mxu3 %v376_v15  ;;  %v338_v58 = vadd.f32 %v1184_v4, %v305_v40  ;;  %v1324_v61 = vadd.f32 %v1184_v4, %v321_v41  ;;  %v319_v62 = vmul.f32 %v1182_v3, %v286_v45  ;;  %v371_v63 = vmax.f32 %v339_v44, 0.0  ;;  %v409_v36 = vld [vmem:[#allocation7 + $0x50] sm:$0xff]  ;;  %v412_v41 = vld [vmem:[#allocation7 + $0x68] sm:$0xff] }
  0x4e   : > { %422 = vmatpush.msra.mxu0 %v375_v25  ;;  %463 = vmatpush.msra.mxu1 %v391_v27  ;;  %v302_v0 = vmul.f32 %v1182_v3, %v269_v52  ;;  %v387_v1 = vmax.f32 %v1312_v47, 0.0  ;;  %v337_v2 = vadd.f32 %v1184_v4, %v304_v48  ;;  %v1333_v7 = vadd.f32 %v1184_v4, %v320_v50  ;;  %v499_v40 = vld [vmem:[#allocation8 + $0x10] sm:$0xff]  ;;  %v498_v42 = vld [vmem:[#allocation8 + $0x8] sm:$0xff] }
  0x4f   : > { %709 = vmatpush.msra.mxu3 %v375_v25  ;;  %v318_v8 = vmul.f32 %v1182_v3, %v285_v56  ;;  %v370_v9 = vmax.f32 %v338_v58, 0.0  ;;  %v386_v10 = vmax.f32 %v1324_v61, 0.0  ;;  %v336_v11 = vadd.f32 %v1184_v4, %v303_v55  ;;  %v411_v25 = vld [vmem:[#allocation7 + $0x60] sm:$0xff] }
  0x50   : > { %423 = vmatpush.msra.mxu0 %v374_v37  ;;  %464 = vmatpush.msra.mxu1 %v390_v38  ;;  %v1341_v12 = vadd.f32 %v1184_v4, %v319_v62  ;;  %v369_v13 = vmax.f32 %v337_v2, 0.0  ;;  %v385_v3 = vmax.f32 %v1333_v7, 0.0  ;;  %v335_v14 = vadd.f32 %v1184_v4, %v302_v0 }
  0x51   : > { %710 = vmatpush.msra.mxu3 %v374_v37  ;;  %v1348_v15 = vadd.f32 %v1184_v4, %v318_v8  ;;  %v368_v17 = vmax.f32 %v336_v11, 0.0  ;;  %v399_v4 = vld [vmem:[#allocation7] sm:$0xff]  ;;  %v410_v37 = vld [vmem:[#allocation7 + $0x58] sm:$0xff] }
  0x52   : > { %424 = vmatpush.msra.mxu0 %v373_v43  ;;  %465 = vmatpush.msra.mxu1 %v389_v46  ;;  %v384_v19 = vmax.f32 %v1341_v12, 0.0  ;;  %v367_v21 = vmax.f32 %v335_v14, 0.0 }
  0x53   : > { %711 = vmatpush.msra.mxu3 %v373_v43  ;;  %v383_v23 = vmax.f32 %v1348_v15, 0.0  ;;  %v497_v43 = vld [vmem:[#allocation8] sm:$0xff] }
  0x54   : > { %425 = vmatpush.msra.mxu0 %v372_v54  ;;  %466 = vmatpush.msra.mxu1 %v388_v57 }
  0x55   : > { %712 = vmatpush.msra.mxu3 %v372_v54 }
  0x56   : > { %426 = vmatpush.msra.mxu0 %v371_v63  ;;  %467 = vmatpush.msra.mxu1 %v387_v1 }
  0x57   : > { %713 = vmatpush.msra.mxu3 %v371_v63 }
  0x58   : > { %427 = vmatpush.msra.mxu0 %v370_v9  ;;  %468 = vmatpush.msra.mxu1 %v386_v10 }
  0x59   : > { %714 = vmatpush.msra.mxu3 %v370_v9 }
  0x5a   : > { %428 = vmatpush.msra.mxu0 %v369_v13  ;;  %469 = vmatpush.msra.mxu1 %v385_v3 }
  0x5b   : > { %715 = vmatpush.msra.mxu3 %v369_v13 }
  0x5c   : > { %429 = vmatpush.msra.mxu0 %v368_v17  ;;  %470 = vmatpush.msra.mxu1 %v384_v19 }
  0x5d   : > { %716 = vmatpush.msra.mxu3 %v368_v17 }
  0x5e   : > { %430 = vmatpush.msra.mxu0 %v367_v21  ;;  %471 = vmatpush.msra.mxu1 %v383_v23 }
  0x5f   : > { %431 = vmatmul.f32.vlgmr.msra.gmra.mxu0 %v399_v4  ;;  %472 = vmatmul.f32.vlgmr.msra.gmra.mxu1 %v400_v24 }
  0x60   : > { %717 = vmatpush.msra.mxu3 %v367_v21 }
  0x61   : > { %449 = vmatmul.f32.vlgmr.msra.gmra.mxu3 %v411_v25 }
  0x62   : > { %718 = vmatpush.msrb.mxu3 %v398_v33  ;;  %v404_v33 = vld [vmem:[#allocation7 + $0x28] sm:$0xff] }
  0x64   : > { %719 = vmatpush.msrb.mxu3 %v397_v35  ;;  %v509_v35 = vld [vmem:[#allocation8 + $0x60] sm:$0xff] }
  0x65   : > { %516 = vmatpush.msra.mxu2 %v509_v35 }
  0x66   : > { %720 = vmatpush.msrb.mxu3 %v396_v39  ;;  %v405_v39 = vld [vmem:[#allocation7 + $0x30] sm:$0xff] }
  0x67   : > { %434 = vmatmul.f32.gmra.mxu0 %v401_v30  ;;  %475 = vmatmul.f32.gmra.mxu1 %v402_v31 }
  0x68   : > { %721 = vmatpush.msrb.mxu3 %v395_v49  ;;  %v406_v49 = vld [vmem:[#allocation7 + $0x38] sm:$0xff]  ;;  %517 = vmatpush.msra.mxu2 %v508_v51 }
  0x69   : > { %452 = vmatmul.f32.gmra.mxu3 %v413_v34 }
  0x6a   : > { %722 = vmatpush.msrb.mxu3 %v394_v59  ;;  %v506_v59 = vld [vmem:[#allocation8 + $0x48] sm:$0xff]  ;;  %518 = vmatpush.msra.mxu2 %v507_v53 }
  0x6c   : > { %723 = vmatpush.msrb.mxu3 %v393_v5  ;;  %v407_v5 = vld [vmem:[#allocation7 + $0x40] sm:$0xff]  ;;  %519 = vmatpush.msra.mxu2 %v506_v59 }
  0x6e   : > { %724 = vmatpush.msrb.mxu3 %v392_v16  ;;  %v504_v16 = vld [vmem:[#allocation8 + $0x38] sm:$0xff]  ;;  %520 = vmatpush.msra.mxu2 %v505_v60 }
  0x6f   : > { %437 = vmatmul.f32.gmra.mxu0 %v403_v20  ;;  %478 = vmatmul.f32.gmra.mxu1 %v404_v33 }
  0x70   : > { %725 = vmatpush.msrb.mxu3 %v391_v27  ;;  %v503_v27 = vld [vmem:[#allocation8 + $0x30] sm:$0xff]  ;;  %521 = vmatpush.msra.mxu2 %v504_v16 }
  0x72   : > { %726 = vmatpush.msrb.mxu3 %v390_v38  ;;  %522 = vmatpush.msra.mxu2 %v503_v27  ;;  %v500_v38 = vld [vmem:[#allocation8 + $0x18] sm:$0xff] }
  0x74   : > { %727 = vmatpush.msrb.mxu3 %v389_v46  ;;  %523 = vmatpush.msra.mxu2 %v502_v29 }
  0x76   : > { %728 = vmatpush.msrb.mxu3 %v388_v57  ;;  %524 = vmatpush.msra.mxu2 %v501_v32 }
  0x77   : > { %440 = vmatmul.f32.gmra.mxu0 %v405_v39  ;;  %481 = vmatmul.f32.gmra.mxu1 %v406_v49 }
  0x78   : > { %729 = vmatpush.msrb.mxu3 %v387_v1  ;;  %525 = vmatpush.msra.mxu2 %v500_v38 }
  0x7a   : > { %730 = vmatpush.msrb.mxu3 %v386_v10  ;;  %526 = vmatpush.msra.mxu2 %v499_v40 }
  0x7c   : > { %731 = vmatpush.msrb.mxu3 %v385_v3  ;;  %527 = vmatpush.msra.mxu2 %v498_v42 }
  0x7e   : > { %732 = vmatpush.msrb.mxu3 %v384_v19  ;;  %528 = vmatpush.msra.mxu2 %v497_v43 }
  0x7f   : > { %443 = vmatmul.f32.gmra.mxu0 %v407_v5  ;;  %484 = vmatmul.f32.gmra.mxu1 %v408_v6 }
  0x80   : > { %733 = vmatpush.msrb.mxu3 %v383_v23 }
  0x81   : > { %493 = vmatmul.f32.vlgmr.msrb.gmra.mxu3 %v414_v18 }
  0x87   : > { %446 = vmatmul.f32.gmra.mxu0 %v409_v36  ;;  %487 = vmatmul.f32.gmra.mxu1 %v410_v37 }
  0x8f   : > { %490 = vmatmul.f32.gmra.mxu1 %v412_v41 }
  0xdc   : > { %v432_v44 = vpop.f32.mrf.mxu0  ;;  %v473_v45 = vpop.f32.mrf.mxu1 }
  0xdd   : > { %v474_v46 = vadd.f32 %v473_v45, %v432_v44 }
  0xdf   : > { %529 = vmatmul.f32.vlgmr.msra.gmra.mxu2 %v474_v46 }
  0xe4   : > { %v435_v47 = vpop.f32.mrf.mxu0  ;;  %v476_v48 = vpop.f32.mrf.mxu1 }
  0xe5   : > { %v477_v50 = vadd.f32 %v476_v48, %v435_v47  ;;  %v450_v0 = vpop.f32.mrf.mxu3 }
  0xe7   : > { %532 = vmatmul.f32.gmra.mxu2 %v477_v50 }
  0xec   : > { %v438_v52 = vpop.f32.mrf.mxu0  ;;  %v479_v54 = vpop.f32.mrf.mxu1 }
  0xed   : > { %v480_v55 = vadd.f32 %v479_v54, %v438_v52  ;;  %v453_v8 = vpop.f32.mrf.mxu3 }
  0xef   : > { %535 = vmatmul.f32.gmra.mxu2 %v480_v55 }
  0xf4   : > { %v441_v56 = vpop.f32.mrf.mxu0  ;;  %v482_v57 = vpop.f32.mrf.mxu1 }
  0xf5   : > { %v483_v58 = vadd.f32 %v482_v57, %v441_v56 }
  0xf7   : > { %538 = vmatmul.f32.gmra.mxu2 %v483_v58 }
  0xfc   : > { %v444_v61 = vpop.f32.mrf.mxu0  ;;  %v485_v62 = vpop.f32.mrf.mxu1 }
  0xfd   : > { %v486_v63 = vadd.f32 %v485_v62, %v444_v61 }
  0xff   : > { %541 = vmatmul.f32.gmra.mxu2 %v486_v63 }
 0x104   : > { %v447_v1 = vpop.f32.mrf.mxu0  ;;  %v488_v2 = vpop.f32.mrf.mxu1 }
 0x105   : > { %v489_v7 = vadd.f32 %v488_v2, %v447_v1  ;;  %v494_v11 = vpop.f32.mrf.mxu3 }
 0x106   : > { %v495_v12 = vadd.f32 %v494_v11, %v453_v8 }
 0x107   : > { %544 = vmatmul.f32.gmra.mxu2 %v489_v7 }
 0x10c   : > { %v491_v9 = vpop.f32.mrf.mxu1 }
 0x10d   : > { %v492_v10 = vadd.f32 %v491_v9, %v450_v0 }
 0x10f   : > { %547 = vmatmul.f32.gmra.mxu2 %v492_v10 }
 0x117   : > { %550 = vmatmul.f32.gmra.mxu2 %v495_v12 }
 0x162   : > { %v530_v13 = vpop.f32.mrf.mxu2 }
 0x163   : > { %554 = vst [vmem:[%s265_s26] sm:$0xff] %v530_v13 }
 0x16a   : > { %v533_v3 = vpop.f32.mrf.mxu2 }
 0x16b   : > { %555 = vst [vmem:[%s265_s26 + $0x8] sm:$0xff] %v533_v3 }
 0x172   : > { %v536_v14 = vpop.f32.mrf.mxu2 }
 0x173   : > { %556 = vst [vmem:[%s265_s26 + $0x10] sm:$0xff] %v536_v14 }
 0x17a   : > { %v539_v15 = vpop.f32.mrf.mxu2 }
 0x17b   : > { %557 = vst [vmem:[%s265_s26 + $0x18] sm:$0xff] %v539_v15 }
 0x182   : > { %v542_v17 = vpop.f32.mrf.mxu2 }
 0x183   : > { %558 = vst [vmem:[%s265_s26 + $0x20] sm:$0xff] %v542_v17 }
 0x18a   : > { %v545_v19 = vpop.f32.mrf.mxu2 }
 0x18b   : > { %559 = vst [vmem:[%s265_s26 + $0x28] sm:$0xff] %v545_v19 }
 0x192   : > { %v548_v21 = vpop.f32.mrf.mxu2 }
 0x193   : > { %560 = vst [vmem:[%s265_s26 + $0x30] sm:$0xff] %v548_v21 }
 0x19a   : > { %v551_v23 = vpop.f32.mrf.mxu2 }
 0x19b   : > { %561 = vst [vmem:[%s265_s26 + $0x38] sm:$0xff] %v551_v23 }
 0x19c   : > { %964 = shalt.err (!%p961_p11)
}
 0x19d   : > { %s1020_s5 = smov 128   ;;  %s1021_s28 = smov 8  }
 0x19e   : > { %748 = dma.vmem_to_hbm [thread:$0]  (%p1132_p3), %s576_s14, 1024, %s578_s20, %s563_s6, %s1020_s5, %s1020_s5, %s1021_s28  }
 0x19f PF: > { %s592_s21 = sand.u32 1, %s999_s15   ;;  %p1437_p12 = scmp.ge.s32.totalorder %s1011_s18, 2 }
 0x1a0   : > { %s593_s26 = scalar_lea.sflag [#allocation4], %s592_s21 }
 0x1a1   : > { %p765_p13 = pnand %p1437_p12, %p1082_p6 }
 0x1a3   : > { %p766_p0 = pneg %p765_p13 }
 0x1a5   : > { %994 = dma.done.wait (%p766_p0), %s593_s26, 1024  }
 0x1a6   : > { %996 = vsyncadd (%p766_p0), %s593_s26, 4294966272  ;;  %p19_p5 = scmp.ge.s32.totalorder %s1119_s25, 4   ;;  %s1438_s15 = smov %s1003_s16 }
 0x1a7   : > { %s1439_s16 = smov %s1007_s17  ;;  %s1440_s17 = smov %s1128_s29 }
 0x1a8   : > { %s1441_s18 = smov %s1119_s25  ;;  %21 = sbr.rel (!%p19_p5) target bundleno = 7 (0x7), region = 93 }
 0x1ad   :  { %599 = vsyncpa [#allocation3], 1 }
 0x1ae   :  { %601 = vsyncpa [#allocation3 + $0x1], 1 }
 0x1af   :  { %602 = vsyncpa [#allocation6], 1 }
 0x1b0   :  { %603 = vsyncpa [#allocation9], 1 }
 0x1b1   :  { %604 = vsyncpa [#allocation4], 1 }
 0x1b2   :  { %606 = vsyncpa [#allocation4 + $0x1], 1 }

</bundles_post_ra>
